<compile_context>
chip_gen: v7x
topology: tpu7x:2x2x1
jax: 0.10.0
libtpu: 0.0.40
codegen_flags: <defaults>
</compile_context>

<pallas_src>
import jax
import jax.numpy as jnp
from jax.experimental import pallas as pl
from jax.experimental.pallas import tpu as pltpu
import numpy as np


def _round_up(x, m):
    return ((x + m - 1) // m) * m


def _tensorcores_per_chip():
    """Best-effort TensorCores-per-chip count (v7x: 2, v5e/v6e: 1)."""
    try:
        info = pltpu.get_tpu_info()
        for name in ("num_cores", "core_count", "num_tensorcores",
                     "tensorcores_per_chip"):
            v = getattr(info, name, None)
            if isinstance(v, int) and v > 0:
                return v
    except Exception:
        pass
    try:
        kind = jax.devices()[0].device_kind.lower()
        if "v7" in kind:
            return 2
    except Exception:
        pass
    return 1


def _pick_batch_tile(B, batch_tile, n_cores):
    """Batch tile aligned for bf16 sublane packing / MXU passes, v7x-aware."""
    B16 = _round_up(B, 16)                          # bf16 packs 16 rows / vreg
    tb = min(_round_up(max(batch_tile, 16), 16), B16)
    if tb < B16 and tb >= 128:
        tb = _round_up(tb, 128)                     # MXU pass alignment (multi-step)
    if n_cores > 1:
        # v7x (2 TCs/chip): keep >= n_cores grid steps so both cores get work.
        per_core = _round_up((B + n_cores - 1) // n_cores, 16)
        tb = min(tb, per_core)
    return max(tb, 16)


def _disc_kernel(d_ref, c_ref, w1_ref, b1_ref, w2_ref, b2_ref,
                 w3r_ref, b3_ref, o_ref):
    # Fused concat along the lane axis (32 + 16 = 48 lanes, fits one vreg row),
    # then a single K=48 bf16 matmul. f32 accumulate, f32 elementwise (v5e-safe).
    x = jnp.concatenate([d_ref[...], c_ref[...]], axis=-1).astype(jnp.bfloat16)

    # Layer 1: (TB,48) @ (48,512)
    h1 = jnp.dot(x, w1_ref[...], preferred_element_type=jnp.float32) + b1_ref[...]
    h1 = jnp.where(h1 > 0, h1, 0.2 * h1)            # LeakyReLU(0.2)

    # Layer 2: (TB,512) @ (512,256)
    h2 = jnp.dot(h1.astype(jnp.bfloat16), w2_ref[...],
                 preferred_element_type=jnp.float32) + b2_ref[...]
    h2 = jnp.where(h2 > 0, h2, 0.2 * h2)            # LeakyReLU(0.2)

    # Layer 3 (256 -> 1): an N=1 matmul wastes 255/256 MXU lanes, so do it on
    # the VPU (mul) + XLU (lane reduce) instead -- effectively free slots here.
    h3 = jnp.sum(h2 * w3r_ref[...], axis=-1, keepdims=True) + b3_ref[...]

    # Exact sigmoid: keeps outputs strictly in (0,1) for downstream BCE losses.
    # NOTE: padded rows of a partial last block may push exp() to inf; harmless,
    # the out-of-range rows are masked on the output write (no cross-row math).
    o_ref[...] = 1.0 / (1.0 + jnp.exp(-h3))


def simple_discriminator(data, cond, params, *, batch_tile=1024):
    """Forward pass of SimpleDiscriminator_.

    data: (B, data_dim) f32
    cond: (B, cond_dim) f32
    params: dict with w1 (data_dim+cond_dim, 512), b1 (1,512), w2 (512,256),
            b2 (1,256), w3 (256,1), b3 (1,1)  (weights already (in, out)).
    returns: (B, 1) f32 validity in (0, 1)
    """
    data = data.astype(jnp.float32)
    cond = cond.astype(jnp.float32)
    B, data_dim = data.shape
    _, cond_dim = cond.shape
    din = data_dim + cond_dim

    # bf16 operands for the two big matmuls; biases / tiny layer-3 stay f32.
    w1 = params["w1"].astype(jnp.bfloat16)                   # (48, 512)
    b1 = params["b1"].astype(jnp.float32)                    # (1, 512)
    w2 = params["w2"].astype(jnp.bfloat16)                   # (512, 256)
    b2 = params["b2"].astype(jnp.float32)                    # (1, 256)
    w3_row = params["w3"].reshape(1, -1).astype(jnp.float32)  # (1, 256) row
    b3 = params["b3"].astype(jnp.float32)                    # (1, 1)

    H1 = w1.shape[1]
    H2 = w2.shape[1]
    Dout = params["w3"].shape[1]

    n_cores = _tensorcores_per_chip()
    TB = _pick_batch_tile(B, batch_tile, n_cores)
    grid = (pl.cdiv(B, TB),)   # partial last block OK: rows are independent

    cost = pl.CostEstimate(
        flops=2 * B * (din * H1 + H1 * H2 + H2),
        transcendentals=B,                                   # sigmoid exp
        bytes_accessed=(4 * B * (din + Dout)                 # activations in/out
                        + 2 * (din * H1 + H1 * H2)           # bf16 weights
                        + 4 * (H1 + H2 + H2 + Dout)),        # biases + w3 row
    )

    out = pl.pallas_call(
        _disc_kernel,
        out_shape=jax.ShapeDtypeStruct((B, Dout), jnp.float32),
        grid_spec=pltpu.PrefetchScalarGridSpec(
            num_scalar_prefetch=0,
            grid=grid,
            in_specs=[
                pl.BlockSpec((TB, data_dim), lambda i: (i, 0)),   # data tile
                pl.BlockSpec((TB, cond_dim), lambda i: (i, 0)),   # cond tile
                pl.BlockSpec((din, H1), lambda i: (0, 0)),        # w1 (resident)
                pl.BlockSpec((1, H1), lambda i: (0, 0)),          # b1
                pl.BlockSpec((H1, H2), lambda i: (0, 0)),         # w2 (resident)
                pl.BlockSpec((1, H2), lambda i: (0, 0)),          # b2
                pl.BlockSpec((1, H2), lambda i: (0, 0)),          # w3 row
                pl.BlockSpec((1, Dout), lambda i: (0, 0)),        # b3
            ],
            out_specs=pl.BlockSpec((TB, Dout), lambda i: (i, 0)),
        ),
        compiler_params=pltpu.CompilerParams(
            dimension_semantics=("parallel",)   # batch tiles shard across TCs
        ),
        cost_estimate=cost,
    )(data, cond, w1, b1, w2, b2, w3_row, b3)

    return out
    # TODO(synk): lane-dense (1, TB) output layout skipped; with Dout=1 the
    # output HBM traffic is negligible next to the bf16 matmuls.


def init_params(key, data_dim, cond_dim):
    """Deterministic init mimicking nn.Linear default U(-1/sqrt(fan_in), 1/sqrt(fan_in))."""
    din = data_dim + cond_dim
    dims = [(din, 512), (512, 256), (256, 1)]
    params = {}
    for idx, (fin, fout) in enumerate(dims, start=1):
        key, kw, kb = jax.random.split(key, 3)
        bound = 1.0 / np.sqrt(fin)
        params[f"w{idx}"] = jax.random.uniform(
            kw, (fin, fout), jnp.float32, -bound, bound)
        params[f"b{idx}"] = jax.random.uniform(
            kb, (1, fout), jnp.float32, -bound, bound)
    return params


def _reference(data, cond, params):
    x = jnp.concatenate([data, cond], axis=1)
    h = x @ params["w1"] + params["b1"]
    h = jnp.where(h > 0, h, 0.2 * h)
    h = h @ params["w2"] + params["b2"]
    h = jnp.where(h > 0, h, 0.2 * h)
    h = h @ params["w3"] + params["b3"]
    return jax.nn.sigmoid(h)


if __name__ == "__main__":
    key = jax.random.PRNGKey(0)
    k_data, k_cond, k_params = jax.random.split(key, 3)

    batch, data_dim, cond_dim = 200, 32, 16
    data = jax.random.normal(k_data, (batch, data_dim), jnp.float32)
    cond = jax.random.normal(k_cond, (batch, cond_dim), jnp.float32)

    params = init_params(k_params, data_dim, cond_dim)
    ref = _reference(data, cond, params)

    # Multi-step grid with a partial last block (200 = 3*64 + 8).
    out = simple_discriminator(data, cond, params, batch_tile=64)
    out = jax.block_until_ready(out)
    assert out.shape == (batch, 1)
    np.testing.assert_allclose(np.asarray(out), np.asarray(ref),
                               rtol=2e-2, atol=2e-2)
    assert float(np.min(np.asarray(out))) >= 0.0
    assert float(np.max(np.asarray(out))) <= 1.0

    # Default (large) batch tile; on 1-TC chips this is a single grid step,
    # on v7x it is capped so both TensorCores get a tile.
    out2 = simple_discriminator(data, cond, params)
    out2 = jax.block_until_ready(out2)
    np.testing.assert_allclose(np.asarray(out2), np.asarray(ref),
                               rtol=2e-2, atol=2e-2)

    print("KERNEL_OK")
</pallas_src>

<mosaic_0001>
module attributes {stable_mosaic.version = 11 : i64} {
  func.func @_disc_kernel(%arg0: i32, %arg1: memref<64x32xf32, #tpu.memory_space<vmem>>, %arg2: memref<64x16xf32, #tpu.memory_space<vmem>>, %arg3: memref<48x512xbf16, #tpu.memory_space<vmem>>, %arg4: memref<1x512xf32, #tpu.memory_space<vmem>>, %arg5: memref<512x256xbf16, #tpu.memory_space<vmem>>, %arg6: memref<1x256xf32, #tpu.memory_space<vmem>>, %arg7: memref<1x256xf32, #tpu.memory_space<vmem>>, %arg8: memref<1x1xf32, #tpu.memory_space<vmem>>, %arg9: memref<64x1xf32, #tpu.memory_space<vmem>>) attributes {dimension_semantics = [#tpu.dimension_semantics<parallel>], iteration_bounds = array<i64: 4>, scalar_prefetch = 0 : i64, scratch_operands = 0 : i64, tpu.core_type = #tpu.core_type<tc>, window_params = [{transform_indices = @transform_0, window_bounds = array<i64: 64, 32>}, {transform_indices = @transform_1, window_bounds = array<i64: 64, 16>}, {pipeline_mode = #tpu.pipeline_mode<synchronous>, transform_indices = @transform_2, window_bounds = array<i64: 48, 512>}, {pipeline_mode = #tpu.pipeline_mode<synchronous>, transform_indices = @transform_3, window_bounds = array<i64: 1, 512>}, {pipeline_mode = #tpu.pipeline_mode<synchronous>, transform_indices = @transform_4, window_bounds = array<i64: 512, 256>}, {pipeline_mode = #tpu.pipeline_mode<synchronous>, transform_indices = @transform_5, window_bounds = array<i64: 1, 256>}, {pipeline_mode = #tpu.pipeline_mode<synchronous>, transform_indices = @transform_6, window_bounds = array<i64: 1, 256>}, {pipeline_mode = #tpu.pipeline_mode<synchronous>, transform_indices = @transform_7, window_bounds = array<i64: 1, 1>}, {transform_indices = @transform_8, window_bounds = array<i64: 64, 1>}]} {
    %c0 = arith.constant 0 : index
    %c0_0 = arith.constant 0 : index
    %0 = vector.load %arg1[%c0, %c0_0] : memref<64x32xf32, #tpu.memory_space<vmem>>, vector<64x32xf32>
    %c0_1 = arith.constant 0 : index
    %c0_2 = arith.constant 0 : index
    %1 = vector.load %arg2[%c0_1, %c0_2] : memref<64x16xf32, #tpu.memory_space<vmem>>, vector<64x16xf32>
    %2 = tpu.concatenate %0, %1 in 1 : vector<64x32xf32>, vector<64x16xf32> -> vector<64x48xf32>
    %3 = arith.truncf %2 : vector<64x48xf32> to vector<64x48xbf16>
    %c0_3 = arith.constant 0 : index
    %c0_4 = arith.constant 0 : index
    %4 = vector.load %arg3[%c0_3, %c0_4] : memref<48x512xbf16, #tpu.memory_space<vmem>>, vector<48x512xbf16>
    %cst = arith.constant dense<0.000000e+00> : vector<64x512xf32>
    %5 = tpu.matmul %3, %4, %cst {dimension_numbers = #tpu.dot_dimension_numbers<[1], [0], [0], [1], [0, 0, 1, 1], [], []>} : vector<64x48xbf16>, vector<48x512xbf16>, vector<64x512xf32> -> vector<64x512xf32>
    %c0_5 = arith.constant 0 : index
    %c0_6 = arith.constant 0 : index
    %6 = vector.load %arg4[%c0_5, %c0_6] : memref<1x512xf32, #tpu.memory_space<vmem>>, vector<1x512xf32>
    %7 = vector.broadcast %6 : vector<1x512xf32> to vector<64x512xf32>
    %8 = arith.addf %5, %7 : vector<64x512xf32>
    %cst_7 = arith.constant 0.000000e+00 : f32
    %9 = vector.broadcast %cst_7 : f32 to vector<64x512xf32>
    %10 = arith.cmpf ogt, %8, %9 : vector<64x512xf32>
    %cst_8 = arith.constant 2.000000e-01 : f32
    %11 = vector.broadcast %cst_8 : f32 to vector<64x512xf32>
    %12 = arith.mulf %11, %8 : vector<64x512xf32>
    %13 = arith.select %10, %8, %12 : vector<64x512xi1>, vector<64x512xf32>
    %14 = arith.truncf %13 : vector<64x512xf32> to vector<64x512xbf16>
    %c0_9 = arith.constant 0 : index
    %c0_10 = arith.constant 0 : index
    %15 = vector.load %arg5[%c0_9, %c0_10] : memref<512x256xbf16, #tpu.memory_space<vmem>>, vector<512x256xbf16>
    %cst_11 = arith.constant dense<0.000000e+00> : vector<64x256xf32>
    %16 = tpu.matmul %14, %15, %cst_11 {dimension_numbers = #tpu.dot_dimension_numbers<[1], [0], [0], [1], [0, 0, 1, 1], [], []>} : vector<64x512xbf16>, vector<512x256xbf16>, vector<64x256xf32> -> vector<64x256xf32>
    %c0_12 = arith.constant 0 : index
    %c0_13 = arith.constant 0 : index
    %17 = vector.load %arg6[%c0_12, %c0_13] : memref<1x256xf32, #tpu.memory_space<vmem>>, vector<1x256xf32>
    %18 = vector.broadcast %17 : vector<1x256xf32> to vector<64x256xf32>
    %19 = arith.addf %16, %18 : vector<64x256xf32>
    %cst_14 = arith.constant 0.000000e+00 : f32
    %20 = vector.broadcast %cst_14 : f32 to vector<64x256xf32>
    %21 = arith.cmpf ogt, %19, %20 : vector<64x256xf32>
    %cst_15 = arith.constant 2.000000e-01 : f32
    %22 = vector.broadcast %cst_15 : f32 to vector<64x256xf32>
    %23 = arith.mulf %22, %19 : vector<64x256xf32>
    %24 = arith.select %21, %19, %23 : vector<64x256xi1>, vector<64x256xf32>
    %c0_16 = arith.constant 0 : index
    %c0_17 = arith.constant 0 : index
    %25 = vector.load %arg7[%c0_16, %c0_17] : memref<1x256xf32, #tpu.memory_space<vmem>>, vector<1x256xf32>
    %26 = vector.broadcast %25 : vector<1x256xf32> to vector<64x256xf32>
    %27 = arith.mulf %24, %26 : vector<64x256xf32>
    %cst_18 = arith.constant dense<0.000000e+00> : vector<64xf32>
    %28 = vector.multi_reduction <add>, %27, %cst_18 [1] : vector<64x256xf32> to vector<64xf32>
    %29 = vector.shape_cast %28 : vector<64xf32> to vector<64x1xf32>
    %c0_19 = arith.constant 0 : index
    %c0_20 = arith.constant 0 : index
    %30 = vector.load %arg8[%c0_19, %c0_20] : memref<1x1xf32, #tpu.memory_space<vmem>>, vector<1x1xf32>
    %31 = vector.broadcast %30 : vector<1x1xf32> to vector<64x1xf32>
    %32 = arith.addf %29, %31 : vector<64x1xf32>
    %cst_21 = arith.constant 0.000000e+00 : f32
    %33 = vector.broadcast %cst_21 : f32 to vector<64x1xf32>
    %34 = arith.subf %33, %32 : vector<64x1xf32>
    %35 = math.exp %34 : vector<64x1xf32>
    %cst_22 = arith.constant 1.000000e+00 : f32
    %36 = vector.broadcast %cst_22 : f32 to vector<64x1xf32>
    %37 = arith.addf %36, %35 : vector<64x1xf32>
    %cst_23 = arith.constant 1.000000e+00 : f32
    %38 = vector.broadcast %cst_23 : f32 to vector<64x1xf32>
    %39 = arith.divf %38, %37 : vector<64x1xf32>
    %c0_24 = arith.constant 0 : index
    %c0_25 = arith.constant 0 : index
    %40 = vector.load %arg9[%c0_24, %c0_25] : memref<64x1xf32, #tpu.memory_space<vmem>>, vector<64x1xf32>
    tpu.vector_store %arg9[%c0_24, %c0_25], %39 {strides = array<i32>} : memref<64x1xf32, #tpu.memory_space<vmem>>, vector<64x1xf32>,
    return
  }
  func.func @transform_0(%arg0: i32) -> (i32, i32) {
    %c0_i32 = arith.constant 0 : i32
    %c0_i32_0 = arith.constant 0 : i32
    return %arg0, %c0_i32 : i32, i32
  }
  func.func @transform_1(%arg0: i32) -> (i32, i32) {
    %c0_i32 = arith.constant 0 : i32
    %c0_i32_0 = arith.constant 0 : i32
    return %arg0, %c0_i32 : i32, i32
  }
  func.func @transform_2(%arg0: i32) -> (i32, i32) {
    %c0_i32 = arith.constant 0 : i32
    %c0_i32_0 = arith.constant 0 : i32
    %c0_i32_1 = arith.constant 0 : i32
    return %c0_i32, %c0_i32_0 : i32, i32
  }
  func.func @transform_3(%arg0: i32) -> (i32, i32) {
    %c0_i32 = arith.constant 0 : i32
    %c0_i32_0 = arith.constant 0 : i32
    %c0_i32_1 = arith.constant 0 : i32
    return %c0_i32, %c0_i32_0 : i32, i32
  }
  func.func @transform_4(%arg0: i32) -> (i32, i32) {
    %c0_i32 = arith.constant 0 : i32
    %c0_i32_0 = arith.constant 0 : i32
    %c0_i32_1 = arith.constant 0 : i32
    return %c0_i32, %c0_i32_0 : i32, i32
  }
  func.func @transform_5(%arg0: i32) -> (i32, i32) {
    %c0_i32 = arith.constant 0 : i32
    %c0_i32_0 = arith.constant 0 : i32
    %c0_i32_1 = arith.constant 0 : i32
    return %c0_i32, %c0_i32_0 : i32, i32
  }
  func.func @transform_6(%arg0: i32) -> (i32, i32) {
    %c0_i32 = arith.constant 0 : i32
    %c0_i32_0 = arith.constant 0 : i32
    %c0_i32_1 = arith.constant 0 : i32
    return %c0_i32, %c0_i32_0 : i32, i32
  }
  func.func @transform_7(%arg0: i32) -> (i32, i32) {
    %c0_i32 = arith.constant 0 : i32
    %c0_i32_0 = arith.constant 0 : i32
    %c0_i32_1 = arith.constant 0 : i32
    return %c0_i32, %c0_i32_0 : i32, i32
  }
  func.func @transform_8(%arg0: i32) -> (i32, i32) {
    %c0_i32 = arith.constant 0 : i32
    %c0_i32_0 = arith.constant 0 : i32
    return %arg0, %c0_i32 : i32, i32
  }
}

</mosaic_0001>

<bundles_post_ra>
// kernel: tpu_custom_call.1
= control target key start
LH: loop header
LB: loop body
LE: loop exit
PB: predicated region body
PF: predicated region fallthrough
CT: control target
= control target key end

     0   :  { %s3002_s0 = inlined_call_operand.vmem [shape: f32[200,32], index: 0, kind: input, shape index: {}]   ;;  %s3003_s1 = inlined_call_operand.vmem [shape: f32[200,16], index: 1, kind: input, shape index: {}]   ;;  %s3004_s2 = inlined_call_operand.hbm [shape: bf16[48,512], index: 2, kind: input, shape index: {}]   ;;  %s3005_s3 = inlined_call_operand.hbm [shape: f32[1,512], index: 3, kind: input, shape index: {}]   ;;  %s3006_s4 = inlined_call_operand.vmem [shape: bf16[512,256], index: 4, kind: input, shape index: {}]   ;;  %s3007_s5 = inlined_call_operand.vmem [shape: f32[1,256], index: 5, kind: input, shape index: {}]   ;;  %s3008_s6 = inlined_call_operand.vmem [shape: f32[1,256], index: 6, kind: input, shape index: {}]   ;;  %s3009_s7 = inlined_call_operand.<no memory space> [shape: f32[1,1], index: 7, kind: input, shape index: {}]   ;;  %s3010_s8 = inlined_call_operand.vmem [shape: f32[200,1], index: 8, kind: output, shape index: {}]  }
   0x1   :  { %v13_v0 = vstv %s3009_s7 }
   0x2   :  { %14 = vst [vmem:[#allocation2] sm:$0x1] %v13_v0 }
   0x3   :  { %15 = vsyncpa [#allocation4], 0 }
   0x4   :  { %16 = vsyncpa [#allocation6], 0  ;;  %s2452_s29 = smov 0   ;;  %s2454_s30 = smov 0  }
   0x5   :  { %s2456_s9 = smov 0  }
   0x6 LB: > { %s2465_s7 = sadd.s32 4294967295, %s2364_s9   ;;  %s2467_s10 = sadd.s32 1, %s2364_s9   ;;  %s2364_s9 = sphi %s2456_s9, %s3027_s9   ;;  %s2360_s30 = sphi %s2454_s30, %s3026_s30   ;;  %s2356_s29 = sphi %s2452_s29, %s3025_s29  }
   0x7   : > { %s204_s11 = ssub.s32 %s2364_s9, %s2467_s10  ;;  %s207_s12 = sadd.s32 1, %s2360_s30 }
   0x8   : > { %p205_p0 = scmp.eq.s32.totalorder %s204_s11, 0  ;;  %p217_p1 = scmp.ne.s32.totalorder %s2360_s30, %s2356_s29 }
   0x9   : > { %p218_p2 = scmp.eq.s32.totalorder %s2465_s7, 3  ;;  %p1818_p3 = scmp.ge.s32.totalorder %s2364_s9, 1 }
   0xa   : > { %s2475_s13 = scalar_select %p205_p0, %s2360_s30, %s207_s12  }
   0xb   : > { %p2477_p4 = por %p218_p2, %p217_p1  ;;  %p231_p5 = scmp.lt.s32.totalorder %s2364_s9, 5 }
   0xc   : > { %p3011_p6 = scmp.eq.s32.totalorder %s2465_s7, 0  ;;  %s2398_s16 = smov [#allocation3]  }
   0xd   : > { %s3013_s14 = scalar_select %p2477_p4, 1, 0 }
   0xe   : > { %p2482_p7 = pnand %p1818_p3, %p231_p5  ;;  %s243_s17 = sshll.u32 %s2398_s16, 4  ;;  %s244_s17 = int_to_ptr.vmem [resolvable:$true] %s243_s17 }
   0xf   : > { %s2399_s19 = smov [#allocation5]   ;;  %s2246_s23 = scalar_lea.hbm %s3004_s2, 1536 }
  0x10   : > { %s3014_s15 = scalar_select %p2482_p7, 1, 0 }
  0x11   : > { %p1975_p8 = pneg %p2482_p7  ;;  %s257_s20 = sshll.u32 %s2399_s19, 4  ;;  %s2494_s20 = int_to_ptr.vmem [resolvable:$true] %s257_s20 }
  0x12   : > { %p2247_p10 = scmp.ne.s32.totalorder %s3004_s2, %s2246_s23  ;;  %p2253_p0 = scmp.lt.u32.totalorder %s2246_s23, %s3004_s2 }
  0x13   : > { %p2490_p9 = pnand %p3011_p6, %p1975_p8 }
  0x15   : > { %p2248_p11 = pneg %p2490_p9 }
  0x17   : > { %p2249_p12 = pnand %p2248_p11, %p2247_p10 }
  0x19   : > { %p2250_p13 = pneg %p2249_p12 }
  0x1b   : > { %p2255_p1 = pnand %p2253_p0, %p2250_p13 }
  0x1d   : > { %2258 = shalt.err (!%p2255_p1)
}
  0x1e   : > { %s2259_s28 = scalar_lea.vmem %s244_s17, 1536  ;;  %p2267_p8 = scmp.lt.s32.totalorder %s244_s17, %s244_s17 }
  0x1f   : > { %p2260_p2 = scmp.ne.s32.totalorder %s244_s17, %s2259_s28  ;;  %p2268_p6 = scmp.lt.s32.totalorder %s2259_s28, %s2259_s28 }
  0x21   : > { %p2262_p3 = pnand %p2260_p2, %p2248_p11  ;;  %p2269_p4 = por %p2268_p6, %p2267_p8 }
  0x23   : > { %p2263_p5 = pneg %p2262_p3 }
  0x25   : > { %p2270_p7 = pnand %p2269_p4, %p2263_p5 }
  0x27   : > { %2273 = shalt.err (!%p2270_p7)
}
  0x28   : > { %s2400_s9 = smov 256   ;;  %s2401_s11 = smov 16  }
  0x29   : > { %1978 = dma.hbm_to_vmem [thread:$0]  (!%p2490_p9), %s3004_s2, 1536, %s244_s17, [#allocation4], %s2400_s9, %s2400_s9, %s2401_s11  }
  0x2a   : > { %s2274_s22 = scalar_lea.hbm %s3005_s3, 64 }
  0x2b   : > { %p2275_p10 = scmp.ne.s32.totalorder %s3005_s3, %s2274_s22  ;;  %p2281_p7 = scmp.lt.u32.totalorder %s2274_s22, %s3005_s3 }
  0x2d   : > { %p2277_p4 = pnand %p2275_p10, %p2248_p11 }
  0x2f   : > { %p2278_p6 = pneg %p2277_p4 }
  0x31   : > { %p2283_p12 = pnand %p2281_p7, %p2278_p6 }
  0x33   : > { %2286 = shalt.err (!%p2283_p12)
}
  0x34   : > { %s2287_s17 = scalar_lea.vmem %s2494_s20, 64  ;;  %p2295_p2 = scmp.lt.s32.totalorder %s2494_s20, %s2494_s20 }
  0x35   : > { %p2288_p13 = scmp.ne.s32.totalorder %s2494_s20, %s2287_s17  ;;  %p2296_p3 = scmp.lt.s32.totalorder %s2287_s17, %s2287_s17 }
  0x37   : > { %p2290_p0 = pnand %p2288_p13, %p2248_p11  ;;  %p2297_p5 = por %p2296_p3, %p2295_p2 }
  0x39   : > { %p2291_p1 = pneg %p2290_p0 }
  0x3b   : > { %p2298_p8 = pnand %p2297_p5, %p2291_p1 }
  0x3d   : > { %2301 = shalt.err (!%p2298_p8)
}
  0x3e   : > { %1981 = dma.hbm_to_vmem [thread:$0]  (!%p2490_p9), %s3005_s3, 64, %s2494_s20, [#allocation6]  }
  0x3f   : > { %p3016_p10 = scmp.ne.s32.totalorder %s3014_s15, 0 }
  0x40   : > { %p3017_p4 = scmp.eq.s32.totalorder (!%p3016_p10), %s2465_s7, 0 }
  0x41   : > { %316 = sbr.rel (%p3016_p10) target bundleno = 909 (0x38d), region = 52 }
  0x48   : > { %2347 = dma.done.wait (%p3017_p4), [#allocation4], 1536   ;;  %p3018_p11 = pmov %p3017_p4 }
  0x49   : > { %p3019_p6 = pmov %p3017_p4 }
  0x4a   : > { %2349 = vsyncadd (%p3018_p11), [#allocation4], 4294965760 }
  0x4b   : > { %2351 = dma.done.wait (%p3019_p6), [#allocation6], 64   ;;  %p3020_p7 = pmov %p3017_p4 }
  0x4c   : > { %s2554_s18 = sshll.u32 %s2465_s7, 3  ;;  %v2402_v1 = vmov 0   ;;  %s2403_s16 = smov 32   ;;  %v2100_v13 = vld [vmem:[#allocation3 + $0x4] ss:$16 sps:$4 sm:$0xff]   ;;  %vm448_vm0 = vcmask 261120  }
  0x4d   : > { %2353 = vsyncadd (%p3020_p7), [#allocation6], 4294967232  ;;  %p371_p9 = scmp.lt.s32.totalorder %s2554_s18, 24  ;;  %600 = vmatprep.mubr.bf16.mxu0 %v2402_v1  ;;  %673 = vmatprep.mubr.bf16.mxu1 %v2402_v1  ;;  %v2102_v15 = vld [vmem:[#allocation3 + $0xc] ss:$16 sps:$4 sm:$0xff]   ;;  %vm555_vm1 = vcmask 392192  }
  0x4e   : > { %v2104_v16 = vld [vmem:[#allocation3] ss:$16 sps:$4 sm:$0xff]   ;;  %568 = vmatprep.subr.bf16.mxu0 %v2100_v13  ;;  %v2105_v17 = vld [vmem:[#allocation3 + $0x8] ss:$16 sps:$4 sm:$0xff]   ;;  %641 = vmatprep.subr.bf16.mxu1 %v2102_v15  ;;  %v2106_v18 = vld [vmem:[#allocation3 + $0x24] ss:$16 sps:$4 sm:$0xff]  }
  0x4f   : > { %s2560_s15 = scalar_select %p371_p9, %s2554_s18, 24  ;;  %569 = vmatpush1.bf16.msra.mxu0 %v2104_v16  ;;  %642 = vmatpush1.bf16.msra.mxu1 %v2105_v17  ;;  %v2108_v19 = vld [vmem:[#allocation3 + $0x2c] ss:$16 sps:$4 sm:$0xff]   ;;  %v2110_v20 = vld [vmem:[#allocation3 + $0x20] ss:$16 sps:$4 sm:$0xff]  }
  0x50   : > { %v2111_v21 = vld [vmem:[#allocation3 + $0x28] ss:$16 sps:$4 sm:$0xff]   ;;  %570 = vmatprep.subr.bf16.mxu0 %v2106_v18  ;;  %643 = vmatprep.subr.bf16.mxu1 %v2108_v19  ;;  %v2112_v22 = vld [vmem:[#allocation3 + $0x44] ss:$16 sps:$4 sm:$0xff]   ;;  %v2114_v23 = vld [vmem:[#allocation3 + $0x4c] ss:$16 sps:$4 sm:$0xff]  }
  0x51   : > { %s1827_s20 = sshll.u32 %s2560_s15, 3  ;;  %v2116_v24 = vld [vmem:[#allocation3 + $0x40] ss:$16 sps:$4 sm:$0xff]   ;;  %v2117_v25 = vld [vmem:[#allocation3 + $0x48] ss:$16 sps:$4 sm:$0xff]   ;;  %s363_s28 = sand.u32 1, %s2356_s29  }
  0x52   : > { %s388_s12 = scalar_lea.vmem %s3003_s1, %s1827_s20  ;;  %v2120_v26 = vld [vmem:[%s3006_s4 + $0x4] ss:$8 sps:$4 sm:$0xff]   ;;  %s2579_s26 = scalar_lea.vmem %s3002_s0, %s1827_s20  ;;  %v2118_v39 = vld [vmem:[%s3006_s4] ss:$8 sps:$4 sm:$0xff]   ;;  %v2126_v43 = vld [vmem:[%s3006_s4 + $0x14] ss:$8 sps:$4 sm:$0xff]  }
  0x53   : > { %v408_v2 = vld [vmem:[%s388_s12] sm:$0xff]  ;;  %v409_v3 = vld [vmem:[%s388_s12 + $0x8] sm:$0xff]  ;;  %v410_v4 = vld [vmem:[%s388_s12 + $0x10] sm:$0xff]  ;;  %571 = vmatpush1.bf16.msra.mxu0 %v2110_v20  ;;  %644 = vmatpush1.bf16.msra.mxu1 %v2111_v21  ;;  %s1825_s15 = sshll.u32 %s363_s28, 6  ;;  %p3021_p12 = scmp.ne.s32.totalorder %s3013_s14, 0 }
  0x54   : > { %v2080_v5 = vpack.i.bf16 %v409_v3, %v408_v2  ;;  %v411_v6 = vld [vmem:[%s388_s12 + $0x18] sm:$0xff]  ;;  %v412_v7 = vld [vmem:[%s388_s12 + $0x20] sm:$0xff]  ;;  %v413_v8 = vld [vmem:[%s388_s12 + $0x28] sm:$0xff]  ;;  %572 = vmatprep.subr.bf16.mxu0 %v2112_v22  ;;  %645 = vmatprep.subr.bf16.mxu1 %v2114_v23  ;;  %s2923_s29 = scalar_lea.vmem [#allocation7], %s1825_s15   ;;  %s1548_s20 = ssub.s32 (%p3021_p12), 25, %s2554_s18 }
  0x55   : > { %v2090_v9 = vpack.i.bf16 %v413_v8, %v412_v7  ;;  %v414_v10 = vld [vmem:[%s388_s12 + $0x30] sm:$0xff]  ;;  %v415_v11 = vld [vmem:[%s388_s12 + $0x38] sm:$0xff]  ;;  %v2085_v12 = vpack.i.bf16 %v411_v6, %v410_v4  ;;  %v2123_v27 = vld [vmem:[%s3006_s4 + $0x104] ss:$8 sps:$4 sm:$0xff]   ;;  %s1932_s9 = sshll.u32 (%p3021_p12), %s2465_s7, 6  ;;  %p1549_p13 = scmp.lt.s32.totalorder (%p3021_p12), %s1548_s20, 8 }
  0x56   : > { %2081 = vrot.lane.b32.xlu0 %v2080_v5, %s2403_s16  ;;  %v2095_v14 = vpack.i.bf16 %v415_v11, %v414_v10  ;;  %v400_v29 = vld [vmem:[%s2579_s26] sm:$0xff]  ;;  %v401_v30 = vld [vmem:[%s2579_s26 + $0x8] sm:$0xff]  ;;  %v402_v35 = vld [vmem:[%s2579_s26 + $0x10] sm:$0xff] }
  0x57   : > { %2091 = vrot.lane.b32.xlu1 %v2090_v9, %s2403_s16  ;;  %573 = vmatpush1.bf16.msra.mxu0 %v2116_v24  ;;  %v403_v38 = vld [vmem:[%s2579_s26 + $0x18] sm:$0xff]  ;;  %v2121_v40 = vld [vmem:[%s3006_s4 + $0x100] ss:$8 sps:$4 sm:$0xff]   ;;  %v2132_v50 = vld [vmem:[%s3006_s4 + $0x24] ss:$8 sps:$4 sm:$0xff]  }
  0x58   : > { %646 = vmatpush1.bf16.msra.mxu1 %v2117_v25  ;;  %1295 = vmatprep.subr.bf16.mxu0 %v2123_v27  ;;  %v2129_v44 = vld [vmem:[%s3006_s4 + $0x114] ss:$8 sps:$4 sm:$0xff]   ;;  %v2124_v48 = vld [vmem:[%s3006_s4 + $0x10] ss:$8 sps:$4 sm:$0xff]   ;;  %v2135_v51 = vld [vmem:[%s3006_s4 + $0x124] ss:$8 sps:$4 sm:$0xff]  }
  0x59   : > { %1222 = vmatprep.subr.bf16.mxu1 %v2120_v26  ;;  %v2127_v49 = vld [vmem:[%s3006_s4 + $0x110] ss:$8 sps:$4 sm:$0xff]   ;;  %v404_v55 = vld [vmem:[%s2579_s26 + $0x20] sm:$0xff]  ;;  %v405_v56 = vld [vmem:[%s2579_s26 + $0x28] sm:$0xff] }
  0x5a   : > { %2086 = vrot.lane.b32.xlu0 %v2085_v12, %s2403_s16  ;;  %v2130_v57 = vld [vmem:[%s3006_s4 + $0x20] ss:$8 sps:$4 sm:$0xff]   ;;  %v2138_v59 = vld [vmem:[%s3006_s4 + $0x34] ss:$8 sps:$4 sm:$0xff]   ;;  %v2136_v0 = vld [vmem:[%s3006_s4 + $0x30] ss:$8 sps:$4 sm:$0xff]  }
  0x5b   : > { %2096 = vrot.lane.b32.xlu1 %v2095_v14, %s2403_s16  ;;  %v2133_v58 = vld [vmem:[%s3006_s4 + $0x120] ss:$8 sps:$4 sm:$0xff]   ;;  %v2141_v60 = vld [vmem:[%s3006_s4 + $0x134] ss:$8 sps:$4 sm:$0xff]   ;;  %v2139_v2 = vld [vmem:[%s3006_s4 + $0x130] ss:$8 sps:$4 sm:$0xff]   ;;  %s2948_s16 = scalar_lea.vmem (%p3021_p12), %s3010_s8, %s1932_s9  }
  0x5c   : > { %v2144_v3 = vld [vmem:[%s3006_s4 + $0x44] ss:$8 sps:$4 sm:$0xff]   ;;  %v406_v8 = vld [vmem:[%s2579_s26 + $0x30] sm:$0xff]  ;;  %v407_v9 = vld [vmem:[%s2579_s26 + $0x38] sm:$0xff] }
  0x5d   : > { %v2147_v4 = vld [vmem:[%s3006_s4 + $0x144] ss:$8 sps:$4 sm:$0xff]   ;;  %v2142_v10 = vld [vmem:[%s3006_s4 + $0x40] ss:$8 sps:$4 sm:$0xff]   ;;  %v2150_v12 = vld [vmem:[%s3006_s4 + $0x54] ss:$8 sps:$4 sm:$0xff]  }
  0x5e   : > { %v2145_v11 = vld [vmem:[%s3006_s4 + $0x140] ss:$8 sps:$4 sm:$0xff]   ;;  %v2153_v13 = vld [vmem:[%s3006_s4 + $0x154] ss:$8 sps:$4 sm:$0xff]   ;;  %v2148_v16 = vld [vmem:[%s3006_s4 + $0x50] ss:$8 sps:$4 sm:$0xff]  }
  0x5f   : > { %v2151_v17 = vld [vmem:[%s3006_s4 + $0x150] ss:$8 sps:$4 sm:$0xff]   ;;  %v2156_v18 = vld [vmem:[%s3006_s4 + $0x64] ss:$8 sps:$4 sm:$0xff]   ;;  %v2154_v20 = vld [vmem:[%s3006_s4 + $0x60] ss:$8 sps:$4 sm:$0xff]  }
  0x60   : > { %v2157_v21 = vld [vmem:[%s3006_s4 + $0x160] ss:$8 sps:$4 sm:$0xff]   ;;  %v2162_v22 = vld [vmem:[%s3006_s4 + $0x74] ss:$8 sps:$4 sm:$0xff]   ;;  %v2160_v24 = vld [vmem:[%s3006_s4 + $0x70] ss:$8 sps:$4 sm:$0xff]  }
  0x61   : > { %v2165_v23 = vld [vmem:[%s3006_s4 + $0x174] ss:$8 sps:$4 sm:$0xff]   ;;  %v2163_v25 = vld [vmem:[%s3006_s4 + $0x170] ss:$8 sps:$4 sm:$0xff]   ;;  %v2168_v26 = vld [vmem:[%s3006_s4 + $0x84] ss:$8 sps:$4 sm:$0xff]  }
  0x62   : > { %v2171_v27 = vld [vmem:[%s3006_s4 + $0x184] ss:$8 sps:$4 sm:$0xff]  }
  0xc8   : > { %v2082_v28 = vpop.permute.xlu0 %2081 }
  0xc9   : > { %v2084_v31 = vunpack.i.h.bf16 %v2082_v28  ;;  %v2083_v32 = vunpack.i.l.bf16 %v2082_v28  ;;  %v2092_v47 = vpop.permute.xlu1 %2091  ;;  %v2166_v28 = vld [vmem:[%s3006_s4 + $0x80] ss:$8 sps:$4 sm:$0xff]  }
  0xca   : > { %v2094_v53 = vunpack.i.h.bf16 %v2092_v47  ;;  %v2093_v54 = vunpack.i.l.bf16 %v2092_v47  ;;  %v2201_v47 = vld [vmem:[%s3006_s4 + $0x1d4] ss:$8 sps:$4 sm:$0xff]  }
  0xcb   : > { %v449_v33 = vsel %vm448_vm0, %v400_v29, %v2083_v32  ;;  %v450_v34 = vsel %vm448_vm0, %v401_v30, %v2084_v31  ;;  %v2169_v29 = vld [vmem:[%s3006_s4 + $0x180] ss:$8 sps:$4 sm:$0xff]   ;;  %v2174_v30 = vld [vmem:[%s3006_s4 + $0x94] ss:$8 sps:$4 sm:$0xff]   ;;  %v2172_v32 = vld [vmem:[%s3006_s4 + $0x90] ss:$8 sps:$4 sm:$0xff]  }
  0xcc   : > { %v457_v36 = vpack.c.bf16 %v450_v34, %v449_v33  ;;  %v2087_v37 = vpop.permute.xlu0 %2086  ;;  %v453_v61 = vsel %vm448_vm0, %v404_v55, %v2093_v54  ;;  %v454_v62 = vsel %vm448_vm0, %v405_v56, %v2094_v53  ;;  %v2177_v31 = vld [vmem:[%s3006_s4 + $0x194] ss:$8 sps:$4 sm:$0xff]   ;;  %v2175_v33 = vld [vmem:[%s3006_s4 + $0x190] ss:$8 sps:$4 sm:$0xff]   ;;  %v2180_v34 = vld [vmem:[%s3006_s4 + $0xa4] ss:$8 sps:$4 sm:$0xff]  }
  0xcd   : > { %v2089_v41 = vunpack.i.h.bf16 %v2087_v37  ;;  %v2088_v42 = vunpack.i.l.bf16 %v2087_v37  ;;  %v2097_v63 = vpop.permute.xlu1 %2096  ;;  %v459_v5 = vpack.c.bf16 %v454_v62, %v453_v61  ;;  %v2181_v37 = vld [vmem:[%s3006_s4 + $0x1a0] ss:$8 sps:$4 sm:$0xff]   ;;  %v2210_v54 = vld [vmem:[%s3006_s4 + $0xf4] ss:$8 sps:$4 sm:$0xff]   ;;  %v2208_v56 = vld [vmem:[%s3006_s4 + $0xf0] ss:$8 sps:$4 sm:$0xff]  }
  0xce   : > { %1842 = vmatmul.mubr.msk.bf16.vlgmr.msra.gmra.mrb[0].mxu0 %vm555_vm1, %v457_v36  ;;  %1846 = vmatmul.mubr.msk.bf16.vlgmr.msra.gmra.mrb[0].mxu1 %vm555_vm1, %v457_v36  ;;  %v2099_v6 = vunpack.i.h.bf16 %v2097_v63  ;;  %v2098_v7 = vunpack.i.l.bf16 %v2097_v63  ;;  %v2178_v36 = vld [vmem:[%s3006_s4 + $0xa0] ss:$8 sps:$4 sm:$0xff]   ;;  %v2213_v55 = vld [vmem:[%s3006_s4 + $0x1f4] ss:$8 sps:$4 sm:$0xff]  }
  0xcf   : > { %v451_v45 = vsel %vm448_vm0, %v402_v35, %v2088_v42  ;;  %v452_v46 = vsel %vm448_vm0, %v403_v38, %v2089_v41  ;;  %610 = vmatprep.mubr.bf16.mxu0 %v2402_v1  ;;  %683 = vmatprep.mubr.bf16.mxu1 %v2402_v1  ;;  %v2183_v35 = vld [vmem:[%s3006_s4 + $0x1a4] ss:$8 sps:$4 sm:$0xff]   ;;  %v2186_v38 = vld [vmem:[%s3006_s4 + $0xb4] ss:$8 sps:$4 sm:$0xff]   ;;  %v2187_v41 = vld [vmem:[%s3006_s4 + $0x1b0] ss:$8 sps:$4 sm:$0xff]  }
  0xd0   : > { %1223 = vmatpush1.bf16.msra.mxu1 %v2118_v39  ;;  %1296 = vmatpush1.bf16.msra.mxu0 %v2121_v40  ;;  %v458_v52 = vpack.c.bf16 %v452_v46, %v451_v45  ;;  %v455_v14 = vsel %vm448_vm0, %v406_v8, %v2098_v7  ;;  %v456_v15 = vsel %vm448_vm0, %v407_v9, %v2099_v6  ;;  %v2189_v39 = vld [vmem:[%s3006_s4 + $0x1b4] ss:$8 sps:$4 sm:$0xff]   ;;  %v2184_v40 = vld [vmem:[%s3006_s4 + $0xb0] ss:$8 sps:$4 sm:$0xff]   ;;  %v2192_v42 = vld [vmem:[%s3006_s4 + $0xc4] ss:$8 sps:$4 sm:$0xff]  }
  0xd1   : > { %1224 = vmatprep.subr.bf16.mxu1 %v2126_v43  ;;  %1297 = vmatprep.subr.bf16.mxu0 %v2129_v44  ;;  %v460_v19 = vpack.c.bf16 %v456_v15, %v455_v14  ;;  %v2195_v43 = vld [vmem:[%s3006_s4 + $0x1c4] ss:$8 sps:$4 sm:$0xff]   ;;  %v2190_v44 = vld [vmem:[%s3006_s4 + $0xc0] ss:$8 sps:$4 sm:$0xff]   ;;  %v2198_v46 = vld [vmem:[%s3006_s4 + $0xd4] ss:$8 sps:$4 sm:$0xff]  }
  0xd2   : > { %v2193_v45 = vld [vmem:[%s3006_s4 + $0x1c0] ss:$8 sps:$4 sm:$0xff]  }
  0xd3   : > { %v2205_v53 = vld [vmem:[%s3006_s4 + $0x1e0] ss:$8 sps:$4 sm:$0xff]  }
  0xd4   : > { %1225 = vmatpush1.bf16.msra.mxu1 %v2124_v48  ;;  %1298 = vmatpush1.bf16.msra.mxu0 %v2127_v49  ;;  %v2196_v48 = vld [vmem:[%s3006_s4 + $0xd0] ss:$8 sps:$4 sm:$0xff]   ;;  %v473_v62 = vld [vmem:[#allocation5] sm:$0xf] }
  0xd5   : > { %1226 = vmatprep.subr.bf16.mxu1 %v2132_v50  ;;  %1299 = vmatprep.subr.bf16.mxu0 %v2135_v51  ;;  %v2199_v49 = vld [vmem:[%s3006_s4 + $0x1d0] ss:$8 sps:$4 sm:$0xff]   ;;  %v2204_v50 = vld [vmem:[%s3006_s4 + $0xe4] ss:$8 sps:$4 sm:$0xff]  }
  0xd6   : > { %1843 = vmatmul.mubr.msk.bf16.gmra.mrb[4].mxu0 %vm555_vm1, %v458_v52  ;;  %1847 = vmatmul.mubr.msk.bf16.gmra.mrb[4].mxu1 %vm555_vm1, %v458_v52  ;;  %v2207_v51 = vld [vmem:[%s3006_s4 + $0x1e4] ss:$8 sps:$4 sm:$0xff]   ;;  %v2202_v52 = vld [vmem:[%s3006_s4 + $0xe0] ss:$8 sps:$4 sm:$0xff]  }
  0xd7   : > { %620 = vmatprep.mubr.bf16.mxu0 %v2402_v1  ;;  %693 = vmatprep.mubr.bf16.mxu1 %v2402_v1 }
  0xd8   : > { %1227 = vmatpush1.bf16.msra.mxu1 %v2130_v57  ;;  %1300 = vmatpush1.bf16.msra.mxu0 %v2133_v58  ;;  %v2211_v57 = vld [vmem:[%s3006_s4 + $0x1f0] ss:$8 sps:$4 sm:$0xff]   ;;  %v475_v58 = vlaneseq }
  0xd9   : > { %1228 = vmatprep.subr.bf16.mxu1 %v2138_v59  ;;  %1301 = vmatprep.subr.bf16.mxu0 %v2141_v60 }
  0xda   : > { %v476_v59 = vshrl.u32 %v475_v58, 7 }
  0xdc   : > { %1229 = vmatpush1.bf16.msra.mxu1 %v2136_v0  ;;  %1302 = vmatpush1.bf16.msra.mxu0 %v2139_v2  ;;  %v2797_v60 = vsub.s32 0, %v476_v59  ;;  %v485_v61 = vsub.s32 2, %v476_v59  ;;  %v2799_v63 = vsub.s32 1, %v476_v59  ;;  %v489_v0 = vsub.s32 3, %v476_v59 }
  0xdd   : > { %1230 = vmatprep.subr.bf16.mxu1 %v2144_v3  ;;  %1303 = vmatprep.subr.bf16.mxu0 %v2147_v4 }
  0xde   : > { %1844 = vmatmul.mubr.msk.bf16.gmra.mrb[8].mxu0 %vm555_vm1, %v459_v5  ;;  %1848 = vmatmul.mubr.msk.bf16.gmra.mrb[8].mxu1 %vm555_vm1, %v459_v5  ;;  %v2802_v2 = vrot.slane %v473_v62, %v2797_v60  ;;  %v2804_v3 = vrot.slane %v473_v62, %v485_v61  ;;  %v2807_v4 = vrot.slane %v473_v62, %v2799_v63 }
  0xdf   : > { %630 = vmatprep.mubr.bf16.mxu0 %v2402_v1  ;;  %703 = vmatprep.mubr.bf16.mxu1 %v2402_v1  ;;  %v2159_v1 = vld [vmem:[%s3006_s4 + $0x164] ss:$8 sps:$4 sm:$0xff]   ;;  %v2809_v5 = vrot.slane %v473_v62, %v489_v0 }
  0xe0   : > { %1231 = vmatpush1.bf16.msra.mxu1 %v2142_v10  ;;  %1304 = vmatpush1.bf16.msra.mxu0 %v2145_v11 }
  0xe1   : > { %1232 = vmatprep.subr.bf16.mxu1 %v2150_v12  ;;  %1305 = vmatprep.subr.bf16.mxu0 %v2153_v13 }
  0xe4   : > { %1233 = vmatpush1.bf16.msra.mxu1 %v2148_v16  ;;  %1306 = vmatpush1.bf16.msra.mxu0 %v2151_v17 }
  0xe5   : > { %1234 = vmatprep.subr.bf16.mxu1 %v2156_v18  ;;  %1307 = vmatprep.subr.bf16.mxu0 %v2159_v1 }
  0xe6   : > { %1845 = vmatmul.mubr.msk.bf16.gmra.mrb[12].mxu0 %vm555_vm1, %v460_v19  ;;  %1849 = vmatmul.mubr.msk.bf16.gmra.mrb[12].mxu1 %vm555_vm1, %v460_v19 }
  0xe8   : > { %1235 = vmatpush1.bf16.msra.mxu1 %v2154_v20  ;;  %1308 = vmatpush1.bf16.msra.mxu0 %v2157_v21 }
  0xe9   : > { %1236 = vmatprep.subr.bf16.mxu1 %v2162_v22  ;;  %1309 = vmatprep.subr.bf16.mxu0 %v2165_v23 }
  0xec   : > { %1237 = vmatpush1.bf16.msra.mxu1 %v2160_v24  ;;  %1310 = vmatpush1.bf16.msra.mxu0 %v2163_v25 }
  0xed   : > { %1238 = vmatprep.subr.bf16.mxu1 %v2168_v26  ;;  %1311 = vmatprep.subr.bf16.mxu0 %v2171_v27 }
  0xf0   : > { %1239 = vmatpush1.bf16.msra.mxu1 %v2166_v28  ;;  %1312 = vmatpush1.bf16.msra.mxu0 %v2169_v29 }
  0xf1   : > { %1240 = vmatprep.subr.bf16.mxu1 %v2174_v30  ;;  %1313 = vmatprep.subr.bf16.mxu0 %v2177_v31 }
  0xf4   : > { %1241 = vmatpush1.bf16.msra.mxu1 %v2172_v32  ;;  %1314 = vmatpush1.bf16.msra.mxu0 %v2175_v33 }
  0xf5   : > { %1242 = vmatprep.subr.bf16.mxu1 %v2180_v34  ;;  %1315 = vmatprep.subr.bf16.mxu0 %v2183_v35 }
  0xf8   : > { %1243 = vmatpush1.bf16.msra.mxu1 %v2178_v36  ;;  %1316 = vmatpush1.bf16.msra.mxu0 %v2181_v37 }
  0xf9   : > { %1244 = vmatprep.subr.bf16.mxu1 %v2186_v38  ;;  %1317 = vmatprep.subr.bf16.mxu0 %v2189_v39 }
  0xfc   : > { %1245 = vmatpush1.bf16.msra.mxu1 %v2184_v40  ;;  %1318 = vmatpush1.bf16.msra.mxu0 %v2187_v41 }
  0xfd   : > { %1246 = vmatprep.subr.bf16.mxu1 %v2192_v42  ;;  %1319 = vmatprep.subr.bf16.mxu0 %v2195_v43 }
 0x100   : > { %1247 = vmatpush1.bf16.msra.mxu1 %v2190_v44  ;;  %1320 = vmatpush1.bf16.msra.mxu0 %v2193_v45 }
 0x101   : > { %1248 = vmatprep.subr.bf16.mxu1 %v2198_v46  ;;  %1321 = vmatprep.subr.bf16.mxu0 %v2201_v47 }
 0x104   : > { %1249 = vmatpush1.bf16.msra.mxu1 %v2196_v48  ;;  %1322 = vmatpush1.bf16.msra.mxu0 %v2199_v49 }
 0x105   : > { %1250 = vmatprep.subr.bf16.mxu1 %v2204_v50  ;;  %1323 = vmatprep.subr.bf16.mxu0 %v2207_v51 }
 0x108   : > { %1251 = vmatpush1.bf16.msra.mxu1 %v2202_v52  ;;  %1324 = vmatpush1.bf16.msra.mxu0 %v2205_v53 }
 0x109   : > { %1252 = vmatprep.subr.bf16.mxu1 %v2210_v54  ;;  %1325 = vmatprep.subr.bf16.mxu0 %v2213_v55 }
 0x10c   : > { %1253 = vmatpush1.bf16.msra.mxu1 %v2208_v56  ;;  %1326 = vmatpush1.bf16.msra.mxu0 %v2211_v57 }
 0x1a1   : > { %v602_v6 = vpop.f32.mrb[0].mxu0  ;;  %v675_v7 = vpop.f32.mrb[0].mxu1 }
 0x1a2   : > { %v603_v8 = vadd.f32 %v602_v6, %v2802_v2  ;;  %v676_v9 = vadd.f32 %v675_v7, %v2804_v3  ;;  %v604_v10 = vpop.f32.mrb[1].mxu0  ;;  %v677_v11 = vpop.f32.mrb[1].mxu1 }
 0x1a3   : > { %v605_v12 = vadd.f32 %v604_v10, %v2807_v4  ;;  %v678_v13 = vadd.f32 %v677_v11, %v2809_v5  ;;  %v606_v14 = vpop.f32.mrb[2].mxu0  ;;  %v679_v15 = vpop.f32.mrb[2].mxu1 }
 0x1a4   : > { %vm714_vm2 = vcmp.gt.f32.partialorder %v603_v8, 0.0  ;;  %v746_v16 = vmul.f32 0.2, %v603_v8  ;;  %vm716_vm3 = vcmp.gt.f32.partialorder %v676_v9, 0.0  ;;  %v748_v17 = vmul.f32 0.2, %v676_v9 }
 0x1a5   : > { %vm715_vm4 = vcmp.gt.f32.partialorder %v605_v12, 0.0  ;;  %v747_v18 = vmul.f32 0.2, %v605_v12  ;;  %vm717_vm5 = vcmp.gt.f32.partialorder %v678_v13, 0.0  ;;  %v749_v1 = vmul.f32 0.2, %v678_v13 }
 0x1a6   : > { %v607_v19 = vadd.f32 %v606_v14, %v2802_v2  ;;  %v680_v20 = vadd.f32 %v679_v15, %v2804_v3  ;;  %v608_v21 = vpop.f32.mrb[3].mxu0  ;;  %v681_v22 = vpop.f32.mrb[3].mxu1  ;;  %v778_v23 = vsel %vm714_vm2, %v603_v8, %v746_v16  ;;  %v780_v24 = vsel %vm716_vm3, %v676_v9, %v748_v17 }
 0x1a7   : > { %v609_v25 = vadd.f32 %v608_v21, %v2807_v4  ;;  %v682_v26 = vadd.f32 %v681_v22, %v2809_v5  ;;  %v779_v35 = vsel %vm715_vm4, %v605_v12, %v747_v18  ;;  %v781_v36 = vsel %vm717_vm5, %v678_v13, %v749_v1 }
 0x1a8   : > { %vm718_vm6 = vcmp.gt.f32.partialorder %v607_v19, 0.0  ;;  %v750_v27 = vmul.f32 0.2, %v607_v19  ;;  %vm720_vm7 = vcmp.gt.f32.partialorder %v680_v20, 0.0  ;;  %v752_v28 = vmul.f32 0.2, %v680_v20 }
 0x1a9   : > { %vm719_vm8 = vcmp.gt.f32.partialorder %v609_v25, 0.0  ;;  %v751_v29 = vmul.f32 0.2, %v609_v25  ;;  %vm721_vm9 = vcmp.gt.f32.partialorder %v682_v26, 0.0  ;;  %v753_v30 = vmul.f32 0.2, %v682_v26 }
 0x1aa   : > { %v782_v31 = vsel %vm718_vm6, %v607_v19, %v750_v27  ;;  %v784_v32 = vsel %vm720_vm7, %v680_v20, %v752_v28  ;;  %v612_v33 = vpop.f32.mrb[4].mxu0  ;;  %v685_v34 = vpop.f32.mrb[4].mxu1 }
 0x1ab   : > { %v810_v37 = vpack.c.bf16 %v782_v31, %v778_v23  ;;  %v812_v38 = vpack.c.bf16 %v784_v32, %v780_v24  ;;  %v613_v39 = vadd.f32 %v612_v33, %v2802_v2  ;;  %v686_v40 = vadd.f32 %v685_v34, %v2804_v3  ;;  %v614_v41 = vpop.f32.mrb[5].mxu0  ;;  %v687_v42 = vpop.f32.mrb[5].mxu1 }
 0x1ac   : > { %v615_v43 = vadd.f32 %v614_v41, %v2807_v4  ;;  %v688_v44 = vadd.f32 %v687_v42, %v2809_v5  ;;  %v616_v45 = vpop.f32.mrb[6].mxu0  ;;  %v689_v46 = vpop.f32.mrb[6].mxu1  ;;  %v783_v47 = vsel %vm719_vm8, %v609_v25, %v751_v29  ;;  %v785_v48 = vsel %vm721_vm9, %v682_v26, %v753_v30 }
 0x1ad   : > { %vm722_vm10 = vcmp.gt.f32.partialorder %v613_v39, 0.0  ;;  %v754_v49 = vmul.f32 0.2, %v613_v39  ;;  %vm724_vm11 = vcmp.gt.f32.partialorder %v686_v40, 0.0  ;;  %v756_v50 = vmul.f32 0.2, %v686_v40 }
 0x1ae   : > { %vm723_vm12 = vcmp.gt.f32.partialorder %v615_v43, 0.0  ;;  %v755_v51 = vmul.f32 0.2, %v615_v43  ;;  %vm725_vm13 = vcmp.gt.f32.partialorder %v688_v44, 0.0  ;;  %v757_v52 = vmul.f32 0.2, %v688_v44 }
 0x1af   : > { %v617_v53 = vadd.f32 %v616_v45, %v2802_v2  ;;  %v690_v54 = vadd.f32 %v689_v46, %v2804_v3  ;;  %v618_v55 = vpop.f32.mrb[7].mxu0  ;;  %v691_v56 = vpop.f32.mrb[7].mxu1  ;;  %v811_v57 = vpack.c.bf16 %v783_v47, %v779_v35  ;;  %v813_v58 = vpack.c.bf16 %v785_v48, %v781_v36 }
 0x1b0   : > { %v619_v59 = vadd.f32 %v618_v55, %v2807_v4  ;;  %v692_v61 = vadd.f32 %v691_v56, %v2809_v5  ;;  %v787_v62 = vsel %vm723_vm12, %v615_v43, %v755_v51  ;;  %v789_v0 = vsel %vm725_vm13, %v688_v44, %v757_v52 }
 0x1b1   : > { %vm726_vm14 = vcmp.gt.f32.partialorder %v617_v53, 0.0  ;;  %v758_v6 = vmul.f32 0.2, %v617_v53  ;;  %vm728_vm15 = vcmp.gt.f32.partialorder %v690_v54, 0.0  ;;  %v760_v7 = vmul.f32 0.2, %v690_v54  ;;  %1254 = vmatprep.mubr.bf16.mxu1 %v811_v57  ;;  %1327 = vmatprep.mubr.bf16.mxu0 %v813_v58 }
 0x1b2   : > { %vm727_vm0 = vcmp.gt.f32.partialorder %v619_v59, 0.0  ;;  %v759_v8 = vmul.f32 0.2, %v619_v59  ;;  %vm729_vm1 = vcmp.gt.f32.partialorder %v692_v61, 0.0  ;;  %v761_v9 = vmul.f32 0.2, %v692_v61  ;;  %1255 = vmatmul.mubr.bf16.vlgmr.msra.gmra.mrb[16].mxu1 %v810_v37  ;;  %1328 = vmatmul.mubr.bf16.vlgmr.msra.gmra.mrb[16].mxu0 %v812_v38 }
 0x1b3   : > { %v622_v10 = vpop.f32.mrb[8].mxu0  ;;  %v695_v11 = vpop.f32.mrb[8].mxu1  ;;  %v786_v12 = vsel %vm722_vm10, %v613_v39, %v754_v49  ;;  %v790_v13 = vsel %vm726_vm14, %v617_v53, %v758_v6  ;;  %v788_v14 = vsel %vm724_vm11, %v686_v40, %v756_v50  ;;  %v792_v15 = vsel %vm728_vm15, %v690_v54, %v760_v7 }
 0x1b4   : > { %v623_v16 = vadd.f32 %v622_v10, %v2802_v2  ;;  %v2835_v17 = vadd.f32 %v695_v11, %v2804_v3  ;;  %v624_v18 = vpop.f32.mrb[9].mxu0  ;;  %v697_v1 = vpop.f32.mrb[9].mxu1  ;;  %v791_v19 = vsel %vm727_vm0, %v619_v59, %v759_v8  ;;  %v793_v20 = vsel %vm729_vm1, %v692_v61, %v761_v9 }
 0x1b5   : > { %v625_v21 = vadd.f32 %v624_v18, %v2807_v4  ;;  %v698_v22 = vadd.f32 %v697_v1, %v2809_v5  ;;  %v626_v23 = vpop.f32.mrb[10].mxu0  ;;  %v699_v24 = vpop.f32.mrb[10].mxu1  ;;  %v815_v25 = vpack.c.bf16 %v791_v19, %v787_v62  ;;  %v817_v26 = vpack.c.bf16 %v793_v20, %v789_v0 }
 0x1b6   : > { %vm730_vm2 = vcmp.gt.f32.partialorder %v623_v16, 0.0  ;;  %v762_v27 = vmul.f32 0.2, %v623_v16  ;;  %vm732_vm3 = vcmp.gt.f32.partialorder %v2835_v17, 0.0  ;;  %v764_v28 = vmul.f32 0.2, %v2835_v17 }
 0x1b7   : > { %vm731_vm4 = vcmp.gt.f32.partialorder %v625_v21, 0.0  ;;  %v763_v29 = vmul.f32 0.2, %v625_v21  ;;  %vm733_vm5 = vcmp.gt.f32.partialorder %v698_v22, 0.0  ;;  %v765_v30 = vmul.f32 0.2, %v698_v22  ;;  %1264 = vmatprep.mubr.bf16.mxu1 %v815_v25  ;;  %1337 = vmatprep.mubr.bf16.mxu0 %v817_v26 }
 0x1b8   : > { %v627_v31 = vadd.f32 %v626_v23, %v2802_v2  ;;  %v2844_v32 = vadd.f32 %v699_v24, %v2804_v3  ;;  %v628_v33 = vpop.f32.mrb[11].mxu0  ;;  %v701_v34 = vpop.f32.mrb[11].mxu1  ;;  %v814_v35 = vpack.c.bf16 %v790_v13, %v786_v12  ;;  %v816_v36 = vpack.c.bf16 %v792_v15, %v788_v14 }
 0x1b9   : > { %v629_v37 = vadd.f32 %v628_v33, %v2807_v4  ;;  %v702_v38 = vadd.f32 %v701_v34, %v2809_v5  ;;  %v632_v39 = vpop.f32.mrb[12].mxu0  ;;  %v705_v40 = vpop.f32.mrb[12].mxu1  ;;  %v795_v41 = vsel %vm731_vm4, %v625_v21, %v763_v29  ;;  %v797_v42 = vsel %vm733_vm5, %v698_v22, %v765_v30  ;;  %v890_v29 = vld [vmem:[%s3007_s5] sm:$0x3] }
 0x1ba   : > { %vm734_vm6 = vcmp.gt.f32.partialorder %v627_v31, 0.0  ;;  %v766_v43 = vmul.f32 0.2, %v627_v31  ;;  %vm736_vm7 = vcmp.gt.f32.partialorder %v2844_v32, 0.0  ;;  %v768_v44 = vmul.f32 0.2, %v2844_v32  ;;  %1265 = vmatmul.mubr.bf16.gmra.mrb[20].mxu1 %v814_v35  ;;  %1338 = vmatmul.mubr.bf16.gmra.mrb[20].mxu0 %v816_v36 }
 0x1bb   : > { %vm735_vm8 = vcmp.gt.f32.partialorder %v629_v37, 0.0  ;;  %v767_v45 = vmul.f32 0.2, %v629_v37  ;;  %vm737_vm9 = vcmp.gt.f32.partialorder %v702_v38, 0.0  ;;  %v769_v46 = vmul.f32 0.2, %v702_v38 }
 0x1bc   : > { %v633_v47 = vadd.f32 %v632_v39, %v2802_v2  ;;  %v706_v48 = vadd.f32 %v705_v40, %v2804_v3  ;;  %v634_v49 = vpop.f32.mrb[13].mxu0  ;;  %v707_v50 = vpop.f32.mrb[13].mxu1  ;;  %v794_v51 = vsel %vm730_vm2, %v623_v16, %v762_v27  ;;  %v798_v52 = vsel %vm734_vm6, %v627_v31, %v766_v43 }
 0x1bd   : > { %v635_v53 = vadd.f32 %v634_v49, %v2807_v4  ;;  %v708_v54 = vadd.f32 %v707_v50, %v2809_v5  ;;  %v636_v55 = vpop.f32.mrb[14].mxu0  ;;  %v709_v56 = vpop.f32.mrb[14].mxu1  ;;  %v799_v57 = vsel %vm735_vm8, %v629_v37, %v767_v45  ;;  %v801_v58 = vsel %vm737_vm9, %v702_v38, %v769_v46  ;;  %v1416_v37 = vld [vmem:[%s3008_s6] sm:$0x3] }
 0x1be   : > { %vm738_vm10 = vcmp.gt.f32.partialorder %v633_v47, 0.0  ;;  %v770_v59 = vmul.f32 0.2, %v633_v47  ;;  %vm740_vm11 = vcmp.gt.f32.partialorder %v706_v48, 0.0  ;;  %v772_v61 = vmul.f32 0.2, %v706_v48 }
 0x1bf   : > { %vm739_vm12 = vcmp.gt.f32.partialorder %v635_v53, 0.0  ;;  %v771_v62 = vmul.f32 0.2, %v635_v53  ;;  %vm741_vm13 = vcmp.gt.f32.partialorder %v708_v54, 0.0  ;;  %v773_v0 = vmul.f32 0.2, %v708_v54 }
 0x1c0   : > { %v637_v6 = vadd.f32 %v636_v55, %v2802_v2  ;;  %v710_v7 = vadd.f32 %v709_v56, %v2804_v3  ;;  %v638_v8 = vpop.f32.mrb[15].mxu0  ;;  %v711_v9 = vpop.f32.mrb[15].mxu1  ;;  %v819_v10 = vpack.c.bf16 %v799_v57, %v795_v41  ;;  %v821_v11 = vpack.c.bf16 %v801_v58, %v797_v42 }
 0x1c1   : > { %v639_v12 = vadd.f32 %v638_v8, %v2807_v4  ;;  %v712_v13 = vadd.f32 %v711_v9, %v2809_v5  ;;  %v818_v14 = vpack.c.bf16 %v798_v52, %v794_v51  ;;  %v796_v15 = vsel %vm732_vm3, %v2835_v17, %v764_v28 }
 0x1c2   : > { %vm742_vm14 = vcmp.gt.f32.partialorder %v637_v6, 0.0  ;;  %v774_v16 = vmul.f32 0.2, %v637_v6  ;;  %vm744_vm15 = vcmp.gt.f32.partialorder %v710_v7, 0.0  ;;  %v776_v18 = vmul.f32 0.2, %v710_v7  ;;  %1274 = vmatprep.mubr.bf16.mxu1 %v819_v10  ;;  %1347 = vmatprep.mubr.bf16.mxu0 %v821_v11 }
 0x1c3   : > { %vm743_vm0 = vcmp.gt.f32.partialorder %v639_v12, 0.0  ;;  %v775_v2 = vmul.f32 0.2, %v639_v12  ;;  %vm745_vm1 = vcmp.gt.f32.partialorder %v712_v13, 0.0  ;;  %v777_v3 = vmul.f32 0.2, %v712_v13  ;;  %1275 = vmatmul.mubr.bf16.gmra.mrb[24].mxu1 %v818_v14 }
 0x1c4   : > { %v800_v4 = vsel %vm736_vm7, %v2844_v32, %v768_v44  ;;  %v803_v5 = vsel %vm739_vm12, %v635_v53, %v771_v62  ;;  %v805_v1 = vsel %vm741_vm13, %v708_v54, %v773_v0  ;;  %v802_v17 = vsel %vm738_vm10, %v633_v47, %v770_v59 }
 0x1c5   : > { %v820_v19 = vpack.c.bf16 %v800_v4, %v796_v15  ;;  %v807_v20 = vsel %vm743_vm0, %v639_v12, %v775_v2  ;;  %v809_v21 = vsel %vm745_vm1, %v712_v13, %v777_v3  ;;  %v806_v22 = vsel %vm742_vm14, %v637_v6, %v774_v16 }
 0x1c6   : > { %v823_v23 = vpack.c.bf16 %v807_v20, %v803_v5  ;;  %v825_v24 = vpack.c.bf16 %v809_v21, %v805_v1  ;;  %v822_v25 = vpack.c.bf16 %v806_v22, %v802_v17  ;;  %v804_v26 = vsel %vm740_vm11, %v706_v48, %v772_v61 }
 0x1c7   : > { %1348 = vmatmul.mubr.bf16.gmra.mrb[24].mxu0 %v820_v19  ;;  %v808_v27 = vsel %vm744_vm15, %v710_v7, %v776_v18  ;;  %v2876_v30 = vrot.slane %v890_v29, %v2797_v60  ;;  %v2879_v31 = vrot.slane %v890_v29, %v2799_v63  ;;  %v2889_v47 = vrot.slane %v1416_v37, %v2797_v60 }
 0x1c8   : > { %1284 = vmatprep.mubr.bf16.mxu1 %v823_v23  ;;  %1357 = vmatprep.mubr.bf16.mxu0 %v825_v24  ;;  %v824_v28 = vpack.c.bf16 %v808_v27, %v804_v26  ;;  %v2892_v50 = vrot.slane %v1416_v37, %v2799_v63 }
 0x1cb   : > { %1285 = vmatmul.mubr.bf16.gmra.mrb[28].mxu1 %v822_v25 }
 0x1cf   : > { %1358 = vmatmul.mubr.bf16.gmra.mrb[28].mxu0 %v824_v28 }
 0x285   : > { %v1256_v32 = vpop.f32.mrb[16].mxu1  ;;  %v1329_v33 = vpop.f32.mrb[16].mxu0 }
 0x286   : > { %v1257_v34 = vadd.f32 %v1256_v32, %v2876_v30  ;;  %v1258_v35 = vpop.f32.mrb[17].mxu1  ;;  %v1331_v36 = vpop.f32.mrb[17].mxu0 }
 0x287   : > { %v1259_v38 = vadd.f32 %v1258_v35, %v2879_v31  ;;  %v1260_v39 = vpop.f32.mrb[18].mxu1  ;;  %v1333_v40 = vpop.f32.mrb[18].mxu0 }
 0x288   : > { %v1330_v41 = vadd.f32 %v1329_v33, %v1257_v34  ;;  %v1261_v42 = vadd.f32 %v1260_v39, %v2876_v30  ;;  %v1262_v43 = vpop.f32.mrb[19].mxu1  ;;  %v1335_v44 = vpop.f32.mrb[19].mxu0 }
 0x289   : > { %v1332_v45 = vadd.f32 %v1331_v36, %v1259_v38  ;;  %v1263_v46 = vadd.f32 %v1262_v43, %v2879_v31 }
 0x28a   : > { %vm1368_vm2 = vcmp.gt.f32.partialorder %v1330_v41, 0.0  ;;  %v1384_v48 = vmul.f32 0.2, %v1330_v41  ;;  %v1334_v49 = vadd.f32 %v1333_v40, %v1261_v42 }
 0x28b   : > { %vm1369_vm3 = vcmp.gt.f32.partialorder %v1332_v45, 0.0  ;;  %v1385_v51 = vmul.f32 0.2, %v1332_v45  ;;  %v1336_v52 = vadd.f32 %v1335_v44, %v1263_v46 }
 0x28c   : > { %vm1370_vm4 = vcmp.gt.f32.partialorder %v1334_v49, 0.0  ;;  %v1386_v53 = vmul.f32 0.2, %v1334_v49  ;;  %v1400_v54 = vsel %vm1368_vm2, %v1330_v41, %v1384_v48  ;;  %vm1531_vm2 = vcmask 7168  }
 0x28d   : > { %vm1371_vm5 = vcmp.gt.f32.partialorder %v1336_v52, 0.0  ;;  %v1387_v55 = vmul.f32 0.2, %v1336_v52  ;;  %v1266_v56 = vpop.f32.mrb[20].mxu1  ;;  %v1339_v57 = vpop.f32.mrb[20].mxu0  ;;  %v1401_v58 = vsel %vm1369_vm3, %v1332_v45, %v1385_v51  ;;  %v1428_v60 = vmul.f32 %v2889_v47, %v1400_v54 }
 0x28e   : > { %v1267_v59 = vadd.f32 %v1266_v56, %v2876_v30  ;;  %v1268_v61 = vpop.f32.mrb[21].mxu1  ;;  %v1341_v62 = vpop.f32.mrb[21].mxu0  ;;  %v1429_v63 = vmul.f32 %v2892_v50, %v1401_v58  ;;  %v1402_v0 = vsel %vm1370_vm4, %v1334_v49, %v1386_v53 }
 0x28f   : > { %v1269_v6 = vadd.f32 %v1268_v61, %v2879_v31  ;;  %v1270_v7 = vpop.f32.mrb[22].mxu1  ;;  %v1343_v8 = vpop.f32.mrb[22].mxu0  ;;  %v1403_v9 = vsel %vm1371_vm5, %v1336_v52, %v1387_v55  ;;  %v1430_v10 = vmul.f32 %v2889_v47, %v1402_v0 }
 0x290   : > { %v1340_v11 = vadd.f32 %v1339_v57, %v1267_v59  ;;  %v1271_v12 = vadd.f32 %v1270_v7, %v2876_v30  ;;  %v1272_v13 = vpop.f32.mrb[23].mxu1  ;;  %v1345_v14 = vpop.f32.mrb[23].mxu0  ;;  %v1444_v15 = vadd.f32 %v1429_v63, %v1428_v60  ;;  %v1431_v16 = vmul.f32 %v2892_v50, %v1403_v9 }
 0x291   : > { %v1342_v18 = vadd.f32 %v1341_v62, %v1269_v6  ;;  %v1273_v2 = vadd.f32 %v1272_v13, %v2879_v31 }
 0x292   : > { %vm1372_vm6 = vcmp.gt.f32.partialorder %v1340_v11, 0.0  ;;  %v1388_v3 = vmul.f32 0.2, %v1340_v11  ;;  %v1344_v4 = vadd.f32 %v1343_v8, %v1271_v12  ;;  %1445 = vadd.xlane.f32.xlu0 %v1444_v15  ;;  %v1447_v5 = vadd.f32 %v1431_v16, %v1430_v10 }
 0x293   : > { %vm1373_vm7 = vcmp.gt.f32.partialorder %v1342_v18, 0.0  ;;  %v1389_v1 = vmul.f32 0.2, %v1342_v18  ;;  %v1346_v17 = vadd.f32 %v1345_v14, %v1273_v2 }
 0x294   : > { %vm1374_vm8 = vcmp.gt.f32.partialorder %v1344_v4, 0.0  ;;  %v1390_v19 = vmul.f32 0.2, %v1344_v4  ;;  %1448 = vadd.xlane.f32.xlu1 %v1447_v5  ;;  %v1404_v20 = vsel %vm1372_vm6, %v1340_v11, %v1388_v3 }
 0x295   : > { %vm1375_vm9 = vcmp.gt.f32.partialorder %v1346_v17, 0.0  ;;  %v1391_v21 = vmul.f32 0.2, %v1346_v17  ;;  %v1405_v22 = vsel %vm1373_vm7, %v1342_v18, %v1389_v1  ;;  %v1432_v23 = vmul.f32 %v2889_v47, %v1404_v20 }
 0x296   : > { %v1276_v24 = vpop.f32.mrb[24].mxu1  ;;  %v1433_v25 = vmul.f32 %v2892_v50, %v1405_v22  ;;  %v1406_v26 = vsel %vm1374_vm8, %v1344_v4, %v1390_v19 }
 0x297   : > { %v1277_v27 = vadd.f32 %v1276_v24, %v2876_v30  ;;  %v1278_v28 = vpop.f32.mrb[25].mxu1  ;;  %v1407_v29 = vsel %vm1375_vm9, %v1346_v17, %v1391_v21  ;;  %v1434_v32 = vmul.f32 %v2889_v47, %v1406_v26 }
 0x298   : > { %v1279_v33 = vadd.f32 %v1278_v28, %v2879_v31  ;;  %v1280_v34 = vpop.f32.mrb[26].mxu1  ;;  %v1450_v35 = vadd.f32 %v1433_v25, %v1432_v23  ;;  %v1435_v36 = vmul.f32 %v2892_v50, %v1407_v29  ;;  %v1914_v29 = vld [vmem:[#allocation2] ss:$0 sm:$0xff] }
 0x299   : > { %v1281_v37 = vadd.f32 %v1280_v34, %v2876_v30  ;;  %v1282_v38 = vpop.f32.mrb[27].mxu1 }
 0x29a   : > { %v1349_v39 = vpop.f32.mrb[24].mxu0  ;;  %v1283_v40 = vadd.f32 %v1282_v38, %v2879_v31  ;;  %1451 = vadd.xlane.f32.xlu0 %v1450_v35  ;;  %v1453_v41 = vadd.f32 %v1435_v36, %v1434_v32 }
 0x29b   : > { %v1350_v42 = vadd.f32 %v1349_v39, %v1277_v27  ;;  %v1351_v43 = vpop.f32.mrb[25].mxu0 }
 0x29c   : > { %v1352_v44 = vadd.f32 %v1351_v43, %v1279_v33  ;;  %v1353_v45 = vpop.f32.mrb[26].mxu0 }
 0x29d   : > { %vm1376_vm10 = vcmp.gt.f32.partialorder %v1350_v42, 0.0  ;;  %v1392_v46 = vmul.f32 0.2, %v1350_v42  ;;  %v1354_v48 = vadd.f32 %v1353_v45, %v1281_v37  ;;  %v1355_v49 = vpop.f32.mrb[27].mxu0 }
 0x29e   : > { %vm1377_vm11 = vcmp.gt.f32.partialorder %v1352_v44, 0.0  ;;  %v1393_v51 = vmul.f32 0.2, %v1352_v44  ;;  %v1356_v52 = vadd.f32 %v1355_v49, %v1283_v40  ;;  %v1286_v53 = vpop.f32.mrb[28].mxu1  ;;  %1454 = vadd.xlane.f32.xlu0 %v1453_v41 }
 0x29f   : > { %vm1378_vm12 = vcmp.gt.f32.partialorder %v1354_v48, 0.0  ;;  %v1394_v54 = vmul.f32 0.2, %v1354_v48  ;;  %v1287_v55 = vadd.f32 %v1286_v53, %v2876_v30  ;;  %v1288_v56 = vpop.f32.mrb[29].mxu1  ;;  %v1408_v57 = vsel %vm1376_vm10, %v1350_v42, %v1392_v46 }
 0x2a0   : > { %vm1379_vm13 = vcmp.gt.f32.partialorder %v1356_v52, 0.0  ;;  %v1395_v58 = vmul.f32 0.2, %v1356_v52  ;;  %v1289_v60 = vadd.f32 %v1288_v56, %v2879_v31  ;;  %v1290_v59 = vpop.f32.mrb[30].mxu1  ;;  %v1409_v61 = vsel %vm1377_vm11, %v1352_v44, %v1393_v51 }
 0x2a1   : > { %v1291_v62 = vadd.f32 %v1290_v59, %v2876_v30  ;;  %v1292_v63 = vpop.f32.mrb[31].mxu1  ;;  %v1436_v0 = vmul.f32 %v2889_v47, %v1408_v57  ;;  %v1437_v6 = vmul.f32 %v2892_v50, %v1409_v61  ;;  %v1410_v7 = vsel %vm1378_vm12, %v1354_v48, %v1394_v54 }
 0x2a2   : > { %v1359_v8 = vpop.f32.mrb[28].mxu0  ;;  %v1293_v9 = vadd.f32 %v1292_v63, %v2879_v31  ;;  %v1411_v10 = vsel %vm1379_vm13, %v1356_v52, %v1395_v58  ;;  %v1438_v11 = vmul.f32 %v2889_v47, %v1410_v7 }
 0x2a3   : > { %v1360_v12 = vadd.f32 %v1359_v8, %v1287_v55  ;;  %v1361_v13 = vpop.f32.mrb[29].mxu0  ;;  %v1456_v14 = vadd.f32 %v1437_v6, %v1436_v0  ;;  %v1439_v15 = vmul.f32 %v2892_v50, %v1411_v10 }
 0x2a4   : > { %v1362_v16 = vadd.f32 %v1361_v13, %v1289_v60  ;;  %v1363_v18 = vpop.f32.mrb[30].mxu0 }
 0x2a5   : > { %vm1380_vm14 = vcmp.gt.f32.partialorder %v1360_v12, 0.0  ;;  %v1396_v30 = vmul.f32 0.2, %v1360_v12  ;;  %v1364_v2 = vadd.f32 %v1363_v18, %v1291_v62  ;;  %v1365_v3 = vpop.f32.mrb[31].mxu0  ;;  %1457 = vadd.xlane.f32.xlu1 %v1456_v14  ;;  %v1459_v4 = vadd.f32 %v1439_v15, %v1438_v11 }
 0x2a6   : > { %vm1381_vm15 = vcmp.gt.f32.partialorder %v1362_v16, 0.0  ;;  %v1397_v5 = vmul.f32 0.2, %v1362_v16  ;;  %v1366_v1 = vadd.f32 %v1365_v3, %v1293_v9 }
 0x2a7   : > { %vm1382_vm0 = vcmp.gt.f32.partialorder %v1364_v2, 0.0  ;;  %v1398_v31 = vmul.f32 0.2, %v1364_v2  ;;  %1460 = vadd.xlane.f32.xlu0 %v1459_v4  ;;  %v1412_v17 = vsel %vm1380_vm14, %v1360_v12, %v1396_v30 }
 0x2a8   : > { %vm1383_vm1 = vcmp.gt.f32.partialorder %v1366_v1, 0.0  ;;  %v1399_v19 = vmul.f32 0.2, %v1366_v1  ;;  %v1413_v20 = vsel %vm1381_vm15, %v1362_v16, %v1397_v5  ;;  %v1440_v21 = vmul.f32 %v2889_v47, %v1412_v17 }
 0x2a9   : > { %v1441_v22 = vmul.f32 %v2892_v50, %v1413_v20  ;;  %v1414_v23 = vsel %vm1382_vm0, %v1364_v2, %v1398_v31 }
 0x2aa   : > { %v1415_v24 = vsel %vm1383_vm1, %v1366_v1, %v1399_v19  ;;  %v1442_v25 = vmul.f32 %v2889_v47, %v1414_v23 }
 0x2ab   : > { %v1462_v26 = vadd.f32 %v1441_v22, %v1440_v21  ;;  %v1443_v27 = vmul.f32 %v2892_v50, %v1415_v24 }
 0x2ad   : > { %1463 = vadd.xlane.f32.xlu1 %v1462_v26  ;;  %v1465_v28 = vadd.f32 %v1443_v27, %v1442_v25 }
 0x2af   : > { %1466 = vadd.xlane.f32.xlu0 %v1465_v28 }
 0x31f   : > { %v1446_v32 = vpop.xlane.xlu0 %1445 }
 0x320   : > { %v1475_v33 = vadd.f32 %v1914_v29, %v1446_v32 }
 0x321   : > { %v1449_v34 = vpop.xlane.xlu1 %1448 }
 0x322   : > { %v1483_v35 = vsub.f32 0.0, %v1475_v33  ;;  %v1476_v36 = vadd.f32 %v1914_v29, %v1449_v34 }
 0x324   : > { %v1491_v37 = vmul.f32 1.442695, %v1483_v35  ;;  %v1484_v38 = vsub.f32 0.0, %v1476_v36 }
 0x326   : > { %2214 = vpow2.f32 %v1491_v37  ;;  %v1493_v39 = vmul.f32 1.442695, %v1484_v38 }
 0x327   : > { %v1452_v40 = vpop.xlane.xlu0 %1451 }
 0x328   : > { %2216 = vpow2.f32 %v1493_v39  ;;  %v1477_v41 = vadd.f32 %v1914_v29, %v1452_v40 }
 0x32a   : > { %v1485_v47 = vsub.f32 0.0, %v1477_v41 }
 0x32b   : > { %v1455_v42 = vpop.xlane.xlu0 %1454 }
 0x32c   : > { %v1495_v50 = vmul.f32 1.442695, %v1485_v47  ;;  %v1478_v43 = vadd.f32 %v1914_v29, %v1455_v42 }
 0x32e   : > { %2218 = vpow2.f32 %v1495_v50  ;;  %v1486_v44 = vsub.f32 0.0, %v1478_v43 }
 0x330   : > { %v2215_v45 = vpop.eup %2214  ;;  %v1497_v46 = vmul.f32 1.442695, %v1486_v44 }
 0x331   : > { %v1507_v48 = vadd.f32 1.0, %v2215_v45 }
 0x332   : > { %v2217_v49 = vpop.eup %2216  ;;  %2220 = vpow2.f32 %v1497_v46  ;;  %v1458_v51 = vpop.xlane.xlu1 %1457 }
 0x333   : > { %2222 = vrcp.f32 %v1507_v48  ;;  %v1508_v52 = vadd.f32 1.0, %v2217_v49  ;;  %v1479_v53 = vadd.f32 %v1914_v29, %v1458_v51 }
 0x334   : > { %v1461_v54 = vpop.xlane.xlu0 %1460 }
 0x335   : > { %2224 = vrcp.f32 %v1508_v52  ;;  %v1487_v55 = vsub.f32 0.0, %v1479_v53  ;;  %v1480_v56 = vadd.f32 %v1914_v29, %v1461_v54 }
 0x337   : > { %v1499_v57 = vmul.f32 1.442695, %v1487_v55  ;;  %v1488_v58 = vsub.f32 0.0, %v1480_v56 }
 0x338   : > { %v2219_v60 = vpop.eup %2218 }
 0x339   : > { %v1509_v59 = vadd.f32 1.0, %v2219_v60  ;;  %2226 = vpow2.f32 %v1499_v57  ;;  %v1501_v61 = vmul.f32 1.442695, %v1488_v58 }
 0x33a   : > { %v1464_v62 = vpop.xlane.xlu1 %1463 }
 0x33b   : > { %2228 = vrcp.f32 %v1509_v59  ;;  %v1481_v63 = vadd.f32 %v1914_v29, %v1464_v62 }
 0x33c   : > { %v2221_v0 = vpop.eup %2220  ;;  %2230 = vpow2.f32 %v1501_v61  ;;  %v1467_v6 = vpop.xlane.xlu0 %1466 }
 0x33d   : > { %v2223_v7 = vpop.eup %2222  ;;  %v1510_v8 = vadd.f32 1.0, %v2221_v0  ;;  %v1489_v9 = vsub.f32 0.0, %v1481_v63  ;;  %v1482_v10 = vadd.f32 %v1914_v29, %v1467_v6 }
 0x33e   : > { %1532 = vst.msk [vmem:[%s2923_s29] sm:$0xff] %vm1531_vm2, %v2223_v7 }
 0x33f   : > { %v2225_v11 = vpop.eup %2224  ;;  %2232 = vrcp.f32 %v1510_v8  ;;  %v1503_v12 = vmul.f32 1.442695, %v1489_v9  ;;  %v1490_v13 = vsub.f32 0.0, %v1482_v10 }
 0x340   : > { %1533 = vst.msk [vmem:[%s2923_s29 + $0x8] sm:$0xff] %vm1531_vm2, %v2225_v11 }
 0x341   : > { %2234 = vpow2.f32 %v1503_v12  ;;  %v1505_v14 = vmul.f32 1.442695, %v1490_v13 }
 0x343   : > { %v2227_v15 = vpop.eup %2226  ;;  %2236 = vpow2.f32 %v1505_v14 }
 0x344   : > { %v1511_v16 = vadd.f32 1.0, %v2227_v15 }
 0x345   : > { %v2229_v18 = vpop.eup %2228 }
 0x346   : > { %v2231_v30 = vpop.eup %2230  ;;  %1534 = vst.msk [vmem:[%s2923_s29 + $0x10] sm:$0xff] %vm1531_vm2, %v2229_v18  ;;  %2238 = vrcp.f32 %v1511_v16 }
 0x347   : > { %v1512_v2 = vadd.f32 1.0, %v2231_v30 }
 0x349   : > { %v2233_v3 = vpop.eup %2232  ;;  %2240 = vrcp.f32 %v1512_v2 }
 0x34a   : > { %1535 = vst.msk [vmem:[%s2923_s29 + $0x18] sm:$0xff] %vm1531_vm2, %v2233_v3 }
 0x34b   : > { %v2235_v4 = vpop.eup %2234 }
 0x34c   : > { %v1513_v5 = vadd.f32 1.0, %v2235_v4 }
 0x34d   : > { %v2237_v1 = vpop.eup %2236 }
 0x34e   : > { %2242 = vrcp.f32 %v1513_v5  ;;  %v1514_v31 = vadd.f32 1.0, %v2237_v1 }
 0x350   : > { %v2239_v17 = vpop.eup %2238  ;;  %2244 = vrcp.f32 %v1514_v31 }
 0x351   : > { %1536 = vst.msk [vmem:[%s2923_s29 + $0x20] sm:$0xff] %vm1531_vm2, %v2239_v17 }
 0x353   : > { %v2241_v19 = vpop.eup %2240 }
 0x354   : > { %1537 = vst.msk [vmem:[%s2923_s29 + $0x28] sm:$0xff] %vm1531_vm2, %v2241_v19 }
 0x355   : > { %1546 = sbr.rel (!%p3021_p12) target bundleno = 909 (0x38d), region = 64 }
 0x358   : > { %v2243_v20 = vpop.eup %2242 }
 0x359   : > { %1538 = vst.msk [vmem:[%s2923_s29 + $0x30] sm:$0xff] %vm1531_vm2, %v2243_v20 }
 0x35a   : > { %v2245_v21 = vpop.eup %2244 }
 0x35b   : > { %1539 = vst.msk [vmem:[%s2923_s29 + $0x38] sm:$0xff] %vm1531_vm2, %v2245_v21 }
 0x35c   : > { %s3029_s20 = smov (!%p1549_p13, %s1548_s20), 8 }
 0x35d   : > { %s1917_s19 = sshll.u32 %s3029_s20, 7 }
 0x35e   : > { %p1920_p0 = scmp.eq.s32.totalorder %s1917_s19, 0 }
 0x35f   : > { %s2954_s26 = sshrl.u32 (!%p1920_p0), %s3029_s20, 3 }
 0x360   : > { %1557 = sbr.rel (%p1920_p0) target bundleno = 909 (0x38d), region = 68  ;;  %p1921_p1 = scmp.le.s32.totalorder (!%p1920_p0), %s2954_s26, 0 }
 0x367   : > { %1749 = sbr.rel (%p1921_p1) target bundleno = 888 (0x378), region = 148  ;;  %s3022_s7 = smov (!%p1921_p1), %s2948_s16 }
 0x368   : > { %s3023_s14 = smov (!%p1921_p1), %s2923_s29  ;;  %s2963_s18 = smov (!%p1921_p1), 0  }
 0x369   : > { %s2965_s21 = smov (!%p1921_p1), 0  }
 0x36e LB: >> { %v1633_v22 = vld [vmem:[%s2372_s14] sm:$0xff]  ;;  %v1635_v23 = vld [vmem:[%s2372_s14 + $0x8] sm:$0xff]  ;;  %v1637_v24 = vld [vmem:[%s2372_s14 + $0x10] sm:$0xff]  ;;  %s1649_s22 = sadd.s32 1, %s2376_s18  ;;  %s1627_s21 = sadd.s32 1, %s2380_s21   ;;  %s2380_s21 = sphi %s2965_s21, %s1627_s21   ;;  %s2376_s18 = sphi %s2963_s18, %s3024_s18   ;;  %s2372_s14 = sphi %s3023_s14, %s1654_s14   ;;  %s2368_s7 = sphi %s3022_s7, %s1655_s7  }
 0x36f   : >> { %1634 = vst [vmem:[%s2368_s7] sm:$0xff] %v1633_v22  ;;  %1636 = vst [vmem:[%s2368_s7 + $0x8] sm:$0xff] %v1635_v23  ;;  %v1639_v25 = vld [vmem:[%s2372_s14 + $0x18] sm:$0xff]  ;;  %v1641_v26 = vld [vmem:[%s2372_s14 + $0x20] sm:$0xff]  ;;  %p1650_p2 = scmp.ge.s32.totalorder %s1649_s22, %s2954_s26  ;;  %p1626_p3 = scmp.ge.s32.totalorder %s1627_s21, %s2954_s26 }
 0x370   : >> { %1638 = vst [vmem:[%s2368_s7 + $0x10] sm:$0xff] %v1637_v24  ;;  %v1643_v27 = vld [vmem:[%s2372_s14 + $0x28] sm:$0xff]  ;;  %1640 = vst [vmem:[%s2368_s7 + $0x18] sm:$0xff] %v1639_v25  ;;  %v1645_v28 = vld [vmem:[%s2372_s14 + $0x30] sm:$0xff] }
 0x371   : >> { %1642 = vst [vmem:[%s2368_s7 + $0x20] sm:$0xff] %v1641_v26  ;;  %1644 = vst [vmem:[%s2368_s7 + $0x28] sm:$0xff] %v1643_v27  ;;  %v1647_v29 = vld [vmem:[%s2372_s14 + $0x38] sm:$0xff]  ;;  %s3031_s22 = smov (%p1650_p2, %s1649_s22), 0  ;;  %1629 = sbr.rel (!%p1626_p3) target bundleno = 878 (0x36e), region = 154 }
 0x372   : >> { %1646 = vst [vmem:[%s2368_s7 + $0x30] sm:$0xff] %v1645_v28  ;;  %1648 = vst [vmem:[%s2368_s7 + $0x38] sm:$0xff] %v1647_v29  ;;  %s1922_s23 = sshll.u32 %s3031_s22, 6  ;;  %s3024_s18 = smov %s3031_s22 }
 0x373   : >> { %s1654_s14 = scalar_lea.vmem %s2923_s29, %s1922_s23 [#allocation7]   ;;  %s1655_s7 = scalar_lea.vmem %s2948_s16, %s1922_s23  }
 0x378 PF: > { %s2984_s24 = sand.u32 7, %s3029_s20   ;;  %s1933_s25 = sshll.u32 %s2954_s26, 6 }
 0x379   : > { %s1660_s17 = scalar_lea.vmem %s2923_s29, %s1933_s25 [#allocation7]   ;;  %s1662_s27 = scalar_lea.vmem %s2948_s16, %s1933_s25  }
 0x37a   : > { %p1927_p5 = scmp.le.s32.totalorder %s2984_s24, 0 }
 0x37b   : > { %s2382_s28 = smov (!%p1927_p5), %s1662_s27   ;;  %s2386_s15 = smov (!%p1927_p5), %s1660_s17  }
 0x37c   : > { %1763 = sbr.rel (%p1927_p5) target bundleno = 909 (0x38d), region = 159  ;;  %s2390_s9 = smov (!%p1927_p5), 0  }
 0x37d   : > { %s2394_s11 = smov (!%p1927_p5), 0  }
 0x383 LB: >> { %v1672_v32 = vld [vmem:[%s2388_s15] sm:$0xff]  ;;  %s1674_s20 = sadd.s32 1, %s2392_s9  ;;  %s1666_s11 = sadd.s32 1, %s2396_s11   ;;  %s2396_s11 = sphi %s2394_s11, %s1666_s11   ;;  %s2392_s9 = sphi %s2390_s9, %s2391_s9   ;;  %s2388_s15 = sphi %s2386_s15, %s1679_s15   ;;  %s2384_s28 = sphi %s2382_s28, %s1680_s28  }
 0x384   : >> { %1673 = vst [vmem:[%s2384_s28] sm:$0xff] %v1672_v32  ;;  %p1675_p8 = scmp.ge.s32.totalorder %s1674_s20, %s2984_s24  ;;  %p1665_p10 = scmp.ge.s32.totalorder %s1666_s11, %s2984_s24 }
 0x386   : >> { %s3033_s20 = smov (%p1675_p8, %s1674_s20), 0  ;;  %1668 = sbr.rel (!%p1665_p10) target bundleno = 899 (0x383), region = 165 }
 0x387   : >> { %s1928_s29 = sshll.u32 %s3033_s20, 3  ;;  %s2391_s9 = smov %s3033_s20  }
 0x388   : >> { %s1679_s15 = scalar_lea.vmem %s1660_s17, %s1928_s29 [#allocation7]   ;;  %s1680_s28 = scalar_lea.vmem %s1662_s27, %s1928_s29  }
 0x38d PF: > { %p19_p4 = scmp.ge.s32.totalorder %s2467_s10, 6   ;;  %s3025_s29 = smov %s2360_s30 }
 0x38e   : > { %s3026_s30 = smov %s2475_s13  ;;  %s3027_s9 = smov %s2467_s10 }
 0x38f   :  { %21 = sbr.rel (!%p19_p4) target bundleno = 6 (0x6), region = 176 }
 0x396   :  { %1696 = vsyncpa [#allocation4], 1 }
 0x397   :  { %1698 = vsyncpa [#allocation4 + $0x1], 1 }
 0x398   :  { %1699 = vsyncpa [#allocation6], 1 }

</bundles_post_ra>
